<compile_context>
chip_gen: v7x
topology: tpu7x:2x2x1
jax: 0.10.0
libtpu: 0.0.40
codegen_flags: <defaults>
</compile_context>

<pallas_src>
import functools

import numpy as np

import jax
import jax.numpy as jnp
from jax import lax
from jax.experimental import pallas as pl
from jax.experimental.pallas import tpu as pltpu

C1, C2 = 16, 32   # conv channel counts fixed by the module
PAD_N = 128       # lane-dense padding for the final logits store
NPAR = 128        # lane stride between even/odd parity halves in packed weights


def _dims(input_size):
    Cin, H, W = input_size
    Ho1, Wo1 = H - 2, W - 2            # conv1 VALID output
    Hp1, Wp1 = Ho1 // 2, Wo1 // 2      # after 2x2 pool
    Ho2, Wo2 = Hp1 - 2, Wp1 - 2        # conv2 VALID output
    Hp2, Wp2 = Ho2 // 2, Wo2 // 2      # after 2x2 pool
    assert Ho1 % 2 == 0 and Wo1 % 2 == 0 and Ho2 % 2 == 0 and Wo2 % 2 == 0, (
        "fused kernel assumes even conv output sizes (true for 18x18 test shape)")
    # TODO(synk): odd conv-output sizes (floor-mode pool drops a row/col) would
    # need an extra masked tap; not required for the shapes exercised here.
    assert Wp1 * C1 <= NPAR and Wp2 * C2 <= NPAR, "lane-packed width must fit 128"
    Hpad = ((H + 7) // 8) * 8          # per-image sublane stride (8-aligned)
    return Cin, H, W, Ho1, Wo1, Hp1, Wp1, Ho2, Wo2, Hp2, Wp2, Hpad


def _pick_batch_block(B, max_bb=8):
    bb = min(B, max_bb)
    while B % bb:
        bb -= 1
    return bb


# ----------------------------------------------------------------------------
# The single fused Pallas kernel (BB images per grid step).
# ----------------------------------------------------------------------------
def _fused_forward_kernel(x_ref, w1_ref, b1_ref, w2_ref, b2_ref,
                          s1e_ref, s1o_ref, s2e_ref, s2o_ref,
                          wfc_ref, bfc_ref, o_ref, p1_ref, *, dims, bb):
    (Cin, H, W, Ho1, Wo1, Hp1, Wp1, Ho2, Wo2, Hp2, Wp2, Hpad) = dims
    f32, bf16 = jnp.float32, jnp.bfloat16
    M1 = bb * Hpad - 2          # stacked conv1 LHS rows (incl. boundary garbage)
    M2 = bb * Hp1 - 2           # stacked conv2 LHS rows (incl. boundary garbage)

    # ---- conv1: dx + w-pool parity folded into banded packed weights --------
    # one aligned full-row (M1, W*Cin) x (W*Cin, 2*NPAR) matmul per dy.
    acc1 = jnp.dot(x_ref[0, 0:M1, :], w1_ref[0], preferred_element_type=f32)
    for dy in (1, 2):
        acc1 = acc1 + jnp.dot(x_ref[0, dy:dy + M1, :], w1_ref[dy],
                              preferred_element_type=f32)
    a1 = jnp.maximum(jnp.maximum(acc1[:, :NPAR], acc1[:, NPAR:]) + b1_ref[...],
                     0.0)                                        # (M1, NPAR)

    # ---- 2x2 h-pool: exact 0/1 selection matmuls (prepped constants); also
    # drops the inter-image boundary rows introduced by batch stacking.
    a1b = a1.astype(bf16)
    p1 = jnp.maximum(jnp.dot(s1e_ref[...], a1b, preferred_element_type=f32),
                     jnp.dot(s1o_ref[...], a1b, preferred_element_type=f32))
    p1_ref[...] = p1.astype(bf16)                                # (bb*Hp1, NPAR)

    # ---- conv2: same banded/parity packing ----------------------------------
    acc2 = jnp.dot(p1_ref[0:M2, :], w2_ref[0], preferred_element_type=f32)
    for dy in (1, 2):
        acc2 = acc2 + jnp.dot(p1_ref[dy:dy + M2, :], w2_ref[dy],
                              preferred_element_type=f32)
    a2 = jnp.maximum(jnp.maximum(acc2[:, :NPAR], acc2[:, NPAR:]) + b2_ref[...],
                     0.0)                                        # (M2, NPAR)

    # ---- 2x2 h-pool, rows emitted p-major so fc uses contiguous BB-row slices
    a2b = a2.astype(bf16)
    p2 = jnp.maximum(jnp.dot(s2e_ref[...], a2b, preferred_element_type=f32),
                     jnp.dot(s2o_ref[...], a2b, preferred_element_type=f32))
    p2b = p2.astype(bf16)                                        # (Hp2*bb, NPAR)

    # ---- fc head: Hp2 matmuls of shape (bb, NPAR) x (NPAR, PAD_N) -----------
    logits = jnp.dot(p2b[0:bb, :], wfc_ref[0], preferred_element_type=f32)
    for p in range(1, Hp2):
        logits = logits + jnp.dot(p2b[p * bb:(p + 1) * bb, :], wfc_ref[p],
                                  preferred_element_type=f32)
    o_ref[0] = logits + bfc_ref[...]


# ----------------------------------------------------------------------------
# Parameters: PyTorch layouts, plus a one-time repack for the kernel.
# ----------------------------------------------------------------------------
def init_params(key, input_size=(3, 18, 18), num_actions=7):
    Cin, H, W = input_size
    ks = jax.random.split(key, 6)
    fc_in = 32 * (H // 4 - 1) * (W // 4 - 1)
    return {
        "conv1_w": 0.10 * jax.random.normal(ks[0], (16, Cin, 3, 3), jnp.float32),
        "conv1_b": 0.10 * jax.random.normal(ks[1], (16,), jnp.float32),
        "conv2_w": 0.05 * jax.random.normal(ks[2], (32, 16, 3, 3), jnp.float32),
        "conv2_b": 0.10 * jax.random.normal(ks[3], (32,), jnp.float32),
        "fc_w": 0.05 * jax.random.normal(ks[4], (num_actions, fc_in), jnp.float32),
        "fc_b": 0.10 * jax.random.normal(ks[5], (num_actions,), jnp.float32),
    }


def prepare_params(params, input_size=(3, 18, 18), num_actions=7, batch_block=1):
    """One-time repack of PyTorch-layout params into the kernel's layouts."""
    (Cin, H, W, Ho1, Wo1, Hp1, Wp1, Ho2, Wo2, Hp2, Wp2, Hpad) = _dims(input_size)
    BB = int(batch_block)
    M1 = BB * Hpad - 2
    M2 = BB * Hp1 - 2
    assert 32 * (H // 4 - 1) * (W // 4 - 1) == C2 * Hp2 * Wp2
    assert num_actions <= PAD_N

    # conv1: OIHW -> per-dy banded block-diagonal (K = W*Cin full row, N = even
    # parity half at lanes [0,NPAR) and odd half at [NPAR,2*NPAR)).
    w1 = np.asarray(params["conv1_w"], np.float32).transpose(2, 3, 1, 0)  # (3,3,Cin,C1)
    w1blk = np.zeros((3, W * Cin, 2 * NPAR), np.float32)
    for dy in range(3):
        for dx in range(3):
            for j in range(Wo1):
                q, s = divmod(j, 2)
                w1blk[dy, (j + dx) * Cin:(j + dx + 1) * Cin,
                      s * NPAR + q * C1: s * NPAR + (q + 1) * C1] = w1[dy, dx]
    b1t = np.zeros((1, NPAR), np.float32)
    b1t[0, :Wp1 * C1] = np.tile(np.asarray(params["conv1_b"], np.float32), Wp1)

    w2 = np.asarray(params["conv2_w"], np.float32).transpose(2, 3, 1, 0)  # (3,3,C1,C2)
    w2blk = np.zeros((3, NPAR, 2 * NPAR), np.float32)
    for dy in range(3):
        for dx in range(3):
            for j in range(Wo2):
                q, s = divmod(j, 2)
                w2blk[dy, (j + dx) * C1:(j + dx + 1) * C1,
                      s * NPAR + q * C2: s * NPAR + (q + 1) * C2] = w2[dy, dx]
    b2t = np.zeros((1, NPAR), np.float32)
    b2t[0, :Wp2 * C2] = np.tile(np.asarray(params["conv2_b"], np.float32), Wp2)

    # h-pool row-selection matrices (exact 0/1); they also discard the garbage
    # rows at per-image boundaries of the batch-stacked activations.
    s1e = np.zeros((BB * Hp1, M1), np.float32)
    s1o = np.zeros((BB * Hp1, M1), np.float32)
    for b in range(BB):
        for r in range(Hp1):
            s1e[b * Hp1 + r, b * Hpad + 2 * r] = 1.0
            s1o[b * Hp1 + r, b * Hpad + 2 * r + 1] = 1.0
    # second pool emits rows p-major (row = p*BB + b) so the fc loop slices
    # contiguous BB-row blocks.
    s2e = np.zeros((Hp2 * BB, M2), np.float32)
    s2o = np.zeros((Hp2 * BB, M2), np.float32)
    for b in range(BB):
        for p in range(Hp2):
            s2e[p * BB + b, b * Hp1 + 2 * p] = 1.0
            s2o[p * BB + b, b * Hp1 + 2 * p + 1] = 1.0

    # fc: permute columns from PyTorch NCHW flatten (c, h, w) to the kernel's
    # (row=h, lane=w*C2+c) packing; K padded to NPAR, actions padded to 128.
    fcw = np.asarray(params["fc_w"], np.float32)                  # (A, C2*Hp2*Wp2)
    wfc = np.zeros((Hp2, NPAR, PAD_N), np.float32)
    for p in range(Hp2):
        for q in range(Wp2):
            for ch in range(C2):
                wfc[p, q * C2 + ch, :num_actions] = \
                    fcw[:, ch * (Hp2 * Wp2) + p * Wp2 + q]
    bfc = np.zeros((1, PAD_N), np.float32)
    bfc[0, :num_actions] = np.asarray(params["fc_b"], np.float32)

    bf16 = jnp.bfloat16
    return {"w1blk": jnp.asarray(w1blk, bf16), "b1t": jnp.asarray(b1t),
            "w2blk": jnp.asarray(w2blk, bf16), "b2t": jnp.asarray(b2t),
            "s1e": jnp.asarray(s1e, bf16), "s1o": jnp.asarray(s1o, bf16),
            "s2e": jnp.asarray(s2e, bf16), "s2o": jnp.asarray(s2o, bf16),
            "wfc": jnp.asarray(wfc, bf16), "bfc": jnp.asarray(bfc)}


# ----------------------------------------------------------------------------
# Forward pass: one pallas_call for the whole network.
# ----------------------------------------------------------------------------
def imitation_model_forward(x_nchw, prepped, *, input_size=(3, 18, 18),
                            num_actions=7, batch_block=1):
    dims = _dims(input_size)
    (Cin, H, W, Ho1, Wo1, Hp1, Wp1, Ho2, Wo2, Hp2, Wp2, Hpad) = dims
    BB = int(batch_block)
    B = x_nchw.shape[0]
    assert B % BB == 0, "batch must be divisible by the batch block"
    assert prepped["s1e"].shape[0] == BB * Hp1, "prepped params built for other BB"
    G = B // BB

    # Wrapper-side glue only: NCHW -> rows=H (zero padded to Hpad), lanes=W*Cin,
    # BB images stacked along the sublane axis per grid step, cast to bf16.
    x = jnp.transpose(x_nchw, (0, 2, 3, 1)).reshape(B, H, W * Cin)
    x = jnp.pad(x, ((0, 0), (0, Hpad - H), (0, 0)))
    x = x.reshape(G, BB * Hpad, W * Cin).astype(jnp.bfloat16)

    def full_spec(a):
        return pl.BlockSpec(a.shape, lambda g, _nd=a.ndim: (0,) * _nd)

    kernel = functools.partial(_fused_forward_kernel, dims=dims, bb=BB)
    out = pl.pallas_call(
        kernel,
        out_shape=jax.ShapeDtypeStruct((G, BB, PAD_N), jnp.float32),
        grid=(G,),
        in_specs=[
            pl.BlockSpec((1, BB * Hpad, W * Cin), lambda g: (g, 0, 0)),
            full_spec(prepped["w1blk"]), full_spec(prepped["b1t"]),
            full_spec(prepped["w2blk"]), full_spec(prepped["b2t"]),
            full_spec(prepped["s1e"]), full_spec(prepped["s1o"]),
            full_spec(prepped["s2e"]), full_spec(prepped["s2o"]),
            full_spec(prepped["wfc"]), full_spec(prepped["bfc"]),
        ],
        out_specs=pl.BlockSpec((1, BB, PAD_N), lambda g: (g, 0, 0)),
        scratch_shapes=[pltpu.VMEM((BB * Hp1, NPAR), jnp.bfloat16)],
        compiler_params=pltpu.CompilerParams(
            dimension_semantics=("parallel",)),
    )(x, prepped["w1blk"], prepped["b1t"], prepped["w2blk"], prepped["b2t"],
      prepped["s1e"], prepped["s1o"], prepped["s2e"], prepped["s2o"],
      prepped["wfc"], prepped["bfc"])
    return out.reshape(B, PAD_N)[:, :num_actions]


# ----------------------------------------------------------------------------
# Pure-JAX (XLA) reference, mirroring the PyTorch module exactly.
# ----------------------------------------------------------------------------
def reference_forward(x_nchw, params):
    dn = ("NCHW", "OIHW", "NCHW")
    prec = lax.Precision.HIGHEST
    y = lax.conv_general_dilated(x_nchw, params["conv1_w"], (1, 1), "VALID",
                                 dimension_numbers=dn, precision=prec)
    y = jnp.maximum(y + params["conv1_b"][None, :, None, None], 0.0)
    y = lax.reduce_window(y, -jnp.inf, lax.max, (1, 1, 2, 2), (1, 1, 2, 2), "VALID")
    y = lax.conv_general_dilated(y, params["conv2_w"], (1, 1), "VALID",
                                 dimension_numbers=dn, precision=prec)
    y = jnp.maximum(y + params["conv2_b"][None, :, None, None], 0.0)
    y = lax.reduce_window(y, -jnp.inf, lax.max, (1, 1, 2, 2), (1, 1, 2, 2), "VALID")
    flat = y.reshape(y.shape[0], -1)                       # nn.Flatten on NCHW
    return jnp.dot(flat, params["fc_w"].T, precision=prec) + params["fc_b"][None, :]


if __name__ == "__main__":
    # Small shapes consistent with the module's arithmetic:
    # H = W = 18 -> 32 * (18//4 - 1)^2 = 288 == actual flattened feature size.
    B = 2
    input_size = (3, 18, 18)
    num_actions = 7  # len(CONFIG['action_types'])

    key = jax.random.PRNGKey(0)
    k_x, k_p = jax.random.split(key)
    x = jax.random.normal(k_x, (B,) + input_size, jnp.float32)
    params = init_params(k_p, input_size=input_size, num_actions=num_actions)

    bb = _pick_batch_block(B)          # 2 here; up to 8 images per grid step
    prepped = prepare_params(params, input_size=input_size,
                             num_actions=num_actions, batch_block=bb)

    fwd = jax.jit(functools.partial(imitation_model_forward,
                                    input_size=input_size,
                                    num_actions=num_actions,
                                    batch_block=bb))
    out = jax.block_until_ready(fwd(x, prepped))

    ref = reference_forward(x, params)
    assert out.shape == (B, num_actions), out.shape
    # Kernel computes on bf16 MXU (f32 accumulation); reference is f32 HIGHEST.
    assert bool(jnp.allclose(out, ref, rtol=1e-2, atol=1e-2)), (out, ref)
    print("KERNEL_OK")
</pallas_src>

<mosaic_0001>
module attributes {stable_mosaic.version = 11 : i64} {
  func.func @_fused_forward_kernel(%arg0: i32, %arg1: memref<1x48x54xbf16, #tpu.memory_space<vmem>>, %arg2: memref<3x54x256xbf16, #tpu.memory_space<vmem>>, %arg3: memref<1x128xf32, #tpu.memory_space<vmem>>, %arg4: memref<3x128x256xbf16, #tpu.memory_space<vmem>>, %arg5: memref<1x128xf32, #tpu.memory_space<vmem>>, %arg6: memref<16x46xbf16, #tpu.memory_space<vmem>>, %arg7: memref<16x46xbf16, #tpu.memory_space<vmem>>, %arg8: memref<6x14xbf16, #tpu.memory_space<vmem>>, %arg9: memref<6x14xbf16, #tpu.memory_space<vmem>>, %arg10: memref<3x128x128xbf16, #tpu.memory_space<vmem>>, %arg11: memref<1x128xf32, #tpu.memory_space<vmem>>, %arg12: memref<1x2x128xf32, #tpu.memory_space<vmem>>, %arg13: memref<16x128xbf16, #tpu.memory_space<vmem>>) attributes {dimension_semantics = [#tpu.dimension_semantics<parallel>], iteration_bounds = array<i64: 1>, scalar_prefetch = 0 : i64, scratch_operands = 1 : i64, tpu.core_type = #tpu.core_type<tc>, window_params = [{transform_indices = @transform_0, window_bounds = array<i64: 1, 48, 54>}, {pipeline_mode = #tpu.pipeline_mode<synchronous>, transform_indices = @transform_1, window_bounds = array<i64: 3, 54, 256>}, {pipeline_mode = #tpu.pipeline_mode<synchronous>, transform_indices = @transform_2, window_bounds = array<i64: 1, 128>}, {pipeline_mode = #tpu.pipeline_mode<synchronous>, transform_indices = @transform_3, window_bounds = array<i64: 3, 128, 256>}, {pipeline_mode = #tpu.pipeline_mode<synchronous>, transform_indices = @transform_4, window_bounds = array<i64: 1, 128>}, {pipeline_mode = #tpu.pipeline_mode<synchronous>, transform_indices = @transform_5, window_bounds = array<i64: 16, 46>}, {pipeline_mode = #tpu.pipeline_mode<synchronous>, transform_indices = @transform_6, window_bounds = array<i64: 16, 46>}, {pipeline_mode = #tpu.pipeline_mode<synchronous>, transform_indices = @transform_7, window_bounds = array<i64: 6, 14>}, {pipeline_mode = #tpu.pipeline_mode<synchronous>, transform_indices = @transform_8, window_bounds = array<i64: 6, 14>}, {pipeline_mode = #tpu.pipeline_mode<synchronous>, transform_indices = @transform_9, window_bounds = array<i64: 3, 128, 128>}, {pipeline_mode = #tpu.pipeline_mode<synchronous>, transform_indices = @transform_10, window_bounds = array<i64: 1, 128>}, {transform_indices = @transform_11, window_bounds = array<i64: 1, 2, 128>}]} {
    %c0 = arith.constant 0 : index
    %c0_0 = arith.constant 0 : index
    %c0_1 = arith.constant 0 : index
    %0 = vector.load %arg1[%c0, %c0_0, %c0_1] : memref<1x48x54xbf16, #tpu.memory_space<vmem>>, vector<1x46x54xbf16>
    %1 = vector.shape_cast %0 : vector<1x46x54xbf16> to vector<46x54xbf16>
    %c0_2 = arith.constant 0 : index
    %c0_3 = arith.constant 0 : index
    %c0_4 = arith.constant 0 : index
    %2 = vector.load %arg2[%c0_2, %c0_3, %c0_4] : memref<3x54x256xbf16, #tpu.memory_space<vmem>>, vector<1x54x256xbf16>
    %3 = vector.shape_cast %2 : vector<1x54x256xbf16> to vector<54x256xbf16>
    %cst = arith.constant dense<0.000000e+00> : vector<46x256xf32>
    %4 = tpu.matmul %1, %3, %cst {dimension_numbers = #tpu.dot_dimension_numbers<[1], [0], [0], [1], [0, 0, 1, 1], [], []>} : vector<46x54xbf16>, vector<54x256xbf16>, vector<46x256xf32> -> vector<46x256xf32>
    %c0_5 = arith.constant 0 : index
    %c1 = arith.constant 1 : index
    %c0_6 = arith.constant 0 : index
    %5 = vector.load %arg1[%c0_5, %c1, %c0_6] : memref<1x48x54xbf16, #tpu.memory_space<vmem>>, vector<1x46x54xbf16>
    %6 = vector.shape_cast %5 : vector<1x46x54xbf16> to vector<46x54xbf16>
    %c1_7 = arith.constant 1 : index
    %c0_8 = arith.constant 0 : index
    %c0_9 = arith.constant 0 : index
    %7 = vector.load %arg2[%c1_7, %c0_8, %c0_9] : memref<3x54x256xbf16, #tpu.memory_space<vmem>>, vector<1x54x256xbf16>
    %8 = vector.shape_cast %7 : vector<1x54x256xbf16> to vector<54x256xbf16>
    %cst_10 = arith.constant dense<0.000000e+00> : vector<46x256xf32>
    %9 = tpu.matmul %6, %8, %cst_10 {dimension_numbers = #tpu.dot_dimension_numbers<[1], [0], [0], [1], [0, 0, 1, 1], [], []>} : vector<46x54xbf16>, vector<54x256xbf16>, vector<46x256xf32> -> vector<46x256xf32>
    %10 = arith.addf %4, %9 : vector<46x256xf32>
    %c0_11 = arith.constant 0 : index
    %c2 = arith.constant 2 : index
    %c0_12 = arith.constant 0 : index
    %11 = vector.load %arg1[%c0_11, %c2, %c0_12] : memref<1x48x54xbf16, #tpu.memory_space<vmem>>, vector<1x46x54xbf16>
    %12 = vector.shape_cast %11 : vector<1x46x54xbf16> to vector<46x54xbf16>
    %c2_13 = arith.constant 2 : index
    %c0_14 = arith.constant 0 : index
    %c0_15 = arith.constant 0 : index
    %13 = vector.load %arg2[%c2_13, %c0_14, %c0_15] : memref<3x54x256xbf16, #tpu.memory_space<vmem>>, vector<1x54x256xbf16>
    %14 = vector.shape_cast %13 : vector<1x54x256xbf16> to vector<54x256xbf16>
    %cst_16 = arith.constant dense<0.000000e+00> : vector<46x256xf32>
    %15 = tpu.matmul %12, %14, %cst_16 {dimension_numbers = #tpu.dot_dimension_numbers<[1], [0], [0], [1], [0, 0, 1, 1], [], []>} : vector<46x54xbf16>, vector<54x256xbf16>, vector<46x256xf32> -> vector<46x256xf32>
    %16 = arith.addf %10, %15 : vector<46x256xf32>
    %17 = vector.extract_strided_slice %16 {offsets = [0, 0], sizes = [46, 128], strides = [1, 1]} : vector<46x256xf32> to vector<46x128xf32>
    %18 = vector.extract_strided_slice %16 {offsets = [0, 128], sizes = [46, 128], strides = [1, 1]} : vector<46x256xf32> to vector<46x128xf32>
    %19 = arith.maximumf %17, %18 : vector<46x128xf32>
    %c0_17 = arith.constant 0 : index
    %c0_18 = arith.constant 0 : index
    %20 = vector.load %arg3[%c0_17, %c0_18] : memref<1x128xf32, #tpu.memory_space<vmem>>, vector<1x128xf32>
    %21 = vector.broadcast %20 : vector<1x128xf32> to vector<46x128xf32>
    %22 = arith.addf %19, %21 : vector<46x128xf32>
    %cst_19 = arith.constant 0.000000e+00 : f32
    %23 = vector.broadcast %cst_19 : f32 to vector<46x128xf32>
    %24 = arith.maximumf %22, %23 : vector<46x128xf32>
    %25 = arith.truncf %24 : vector<46x128xf32> to vector<46x128xbf16>
    %c0_20 = arith.constant 0 : index
    %c0_21 = arith.constant 0 : index
    %26 = vector.load %arg6[%c0_20, %c0_21] : memref<16x46xbf16, #tpu.memory_space<vmem>>, vector<16x46xbf16>
    %cst_22 = arith.constant dense<0.000000e+00> : vector<16x128xf32>
    %27 = tpu.matmul %26, %25, %cst_22 {dimension_numbers = #tpu.dot_dimension_numbers<[1], [0], [0], [1], [0, 0, 1, 1], [], []>} : vector<16x46xbf16>, vector<46x128xbf16>, vector<16x128xf32> -> vector<16x128xf32>
    %c0_23 = arith.constant 0 : index
    %c0_24 = arith.constant 0 : index
    %28 = vector.load %arg7[%c0_23, %c0_24] : memref<16x46xbf16, #tpu.memory_space<vmem>>, vector<16x46xbf16>
    %cst_25 = arith.constant dense<0.000000e+00> : vector<16x128xf32>
    %29 = tpu.matmul %28, %25, %cst_25 {dimension_numbers = #tpu.dot_dimension_numbers<[1], [0], [0], [1], [0, 0, 1, 1], [], []>} : vector<16x46xbf16>, vector<46x128xbf16>, vector<16x128xf32> -> vector<16x128xf32>
    %30 = arith.maximumf %27, %29 : vector<16x128xf32>
    %31 = arith.truncf %30 : vector<16x128xf32> to vector<16x128xbf16>
    %c0_26 = arith.constant 0 : index
    %c0_27 = arith.constant 0 : index
    %32 = vector.load %arg13[%c0_26, %c0_27] : memref<16x128xbf16, #tpu.memory_space<vmem>>, vector<16x128xbf16>
    tpu.vector_store %arg13[%c0_26, %c0_27], %31 {strides = array<i32>} : memref<16x128xbf16, #tpu.memory_space<vmem>>, vector<16x128xbf16>,
    %c0_28 = arith.constant 0 : index
    %c0_29 = arith.constant 0 : index
    %33 = vector.load %arg13[%c0_28, %c0_29] : memref<16x128xbf16, #tpu.memory_space<vmem>>, vector<14x128xbf16>
    %c0_30 = arith.constant 0 : index
    %c0_31 = arith.constant 0 : index
    %c0_32 = arith.constant 0 : index
    %34 = vector.load %arg4[%c0_30, %c0_31, %c0_32] : memref<3x128x256xbf16, #tpu.memory_space<vmem>>, vector<1x128x256xbf16>
    %35 = vector.shape_cast %34 : vector<1x128x256xbf16> to vector<128x256xbf16>
    %cst_33 = arith.constant dense<0.000000e+00> : vector<14x256xf32>
    %36 = tpu.matmul %33, %35, %cst_33 {dimension_numbers = #tpu.dot_dimension_numbers<[1], [0], [0], [1], [0, 0, 1, 1], [], []>} : vector<14x128xbf16>, vector<128x256xbf16>, vector<14x256xf32> -> vector<14x256xf32>
    %c1_34 = arith.constant 1 : index
    %c0_35 = arith.constant 0 : index
    %37 = vector.load %arg13[%c1_34, %c0_35] : memref<16x128xbf16, #tpu.memory_space<vmem>>, vector<14x128xbf16>
    %c1_36 = arith.constant 1 : index
    %c0_37 = arith.constant 0 : index
    %c0_38 = arith.constant 0 : index
    %38 = vector.load %arg4[%c1_36, %c0_37, %c0_38] : memref<3x128x256xbf16, #tpu.memory_space<vmem>>, vector<1x128x256xbf16>
    %39 = vector.shape_cast %38 : vector<1x128x256xbf16> to vector<128x256xbf16>
    %cst_39 = arith.constant dense<0.000000e+00> : vector<14x256xf32>
    %40 = tpu.matmul %37, %39, %cst_39 {dimension_numbers = #tpu.dot_dimension_numbers<[1], [0], [0], [1], [0, 0, 1, 1], [], []>} : vector<14x128xbf16>, vector<128x256xbf16>, vector<14x256xf32> -> vector<14x256xf32>
    %41 = arith.addf %36, %40 : vector<14x256xf32>
    %c2_40 = arith.constant 2 : index
    %c0_41 = arith.constant 0 : index
    %42 = vector.load %arg13[%c2_40, %c0_41] : memref<16x128xbf16, #tpu.memory_space<vmem>>, vector<14x128xbf16>
    %c2_42 = arith.constant 2 : index
    %c0_43 = arith.constant 0 : index
    %c0_44 = arith.constant 0 : index
    %43 = vector.load %arg4[%c2_42, %c0_43, %c0_44] : memref<3x128x256xbf16, #tpu.memory_space<vmem>>, vector<1x128x256xbf16>
    %44 = vector.shape_cast %43 : vector<1x128x256xbf16> to vector<128x256xbf16>
    %cst_45 = arith.constant dense<0.000000e+00> : vector<14x256xf32>
    %45 = tpu.matmul %42, %44, %cst_45 {dimension_numbers = #tpu.dot_dimension_numbers<[1], [0], [0], [1], [0, 0, 1, 1], [], []>} : vector<14x128xbf16>, vector<128x256xbf16>, vector<14x256xf32> -> vector<14x256xf32>
    %46 = arith.addf %41, %45 : vector<14x256xf32>
    %47 = vector.extract_strided_slice %46 {offsets = [0, 0], sizes = [14, 128], strides = [1, 1]} : vector<14x256xf32> to vector<14x128xf32>
    %48 = vector.extract_strided_slice %46 {offsets = [0, 128], sizes = [14, 128], strides = [1, 1]} : vector<14x256xf32> to vector<14x128xf32>
    %49 = arith.maximumf %47, %48 : vector<14x128xf32>
    %c0_46 = arith.constant 0 : index
    %c0_47 = arith.constant 0 : index
    %50 = vector.load %arg5[%c0_46, %c0_47] : memref<1x128xf32, #tpu.memory_space<vmem>>, vector<1x128xf32>
    %51 = vector.broadcast %50 : vector<1x128xf32> to vector<14x128xf32>
    %52 = arith.addf %49, %51 : vector<14x128xf32>
    %cst_48 = arith.constant 0.000000e+00 : f32
    %53 = vector.broadcast %cst_48 : f32 to vector<14x128xf32>
    %54 = arith.maximumf %52, %53 : vector<14x128xf32>
    %55 = arith.truncf %54 : vector<14x128xf32> to vector<14x128xbf16>
    %c0_49 = arith.constant 0 : index
    %c0_50 = arith.constant 0 : index
    %56 = vector.load %arg8[%c0_49, %c0_50] : memref<6x14xbf16, #tpu.memory_space<vmem>>, vector<6x14xbf16>
    %cst_51 = arith.constant dense<0.000000e+00> : vector<6x128xf32>
    %57 = tpu.matmul %56, %55, %cst_51 {dimension_numbers = #tpu.dot_dimension_numbers<[1], [0], [0], [1], [0, 0, 1, 1], [], []>} : vector<6x14xbf16>, vector<14x128xbf16>, vector<6x128xf32> -> vector<6x128xf32>
    %c0_52 = arith.constant 0 : index
    %c0_53 = arith.constant 0 : index
    %58 = vector.load %arg9[%c0_52, %c0_53] : memref<6x14xbf16, #tpu.memory_space<vmem>>, vector<6x14xbf16>
    %cst_54 = arith.constant dense<0.000000e+00> : vector<6x128xf32>
    %59 = tpu.matmul %58, %55, %cst_54 {dimension_numbers = #tpu.dot_dimension_numbers<[1], [0], [0], [1], [0, 0, 1, 1], [], []>} : vector<6x14xbf16>, vector<14x128xbf16>, vector<6x128xf32> -> vector<6x128xf32>
    %60 = arith.maximumf %57, %59 : vector<6x128xf32>
    %61 = arith.truncf %60 : vector<6x128xf32> to vector<6x128xbf16>
    %62 = vector.extract_strided_slice %61 {offsets = [0, 0], sizes = [2, 128], strides = [1, 1]} : vector<6x128xbf16> to vector<2x128xbf16>
    %c0_55 = arith.constant 0 : index
    %c0_56 = arith.constant 0 : index
    %c0_57 = arith.constant 0 : index
    %63 = vector.load %arg10[%c0_55, %c0_56, %c0_57] : memref<3x128x128xbf16, #tpu.memory_space<vmem>>, vector<1x128x128xbf16>
    %64 = vector.shape_cast %63 : vector<1x128x128xbf16> to vector<128x128xbf16>
    %cst_58 = arith.constant dense<0.000000e+00> : vector<2x128xf32>
    %65 = tpu.matmul %62, %64, %cst_58 {dimension_numbers = #tpu.dot_dimension_numbers<[1], [0], [0], [1], [0, 0, 1, 1], [], []>} : vector<2x128xbf16>, vector<128x128xbf16>, vector<2x128xf32> -> vector<2x128xf32>
    %66 = vector.extract_strided_slice %61 {offsets = [2, 0], sizes = [2, 128], strides = [1, 1]} : vector<6x128xbf16> to vector<2x128xbf16>
    %c1_59 = arith.constant 1 : index
    %c0_60 = arith.constant 0 : index
    %c0_61 = arith.constant 0 : index
    %67 = vector.load %arg10[%c1_59, %c0_60, %c0_61] : memref<3x128x128xbf16, #tpu.memory_space<vmem>>, vector<1x128x128xbf16>
    %68 = vector.shape_cast %67 : vector<1x128x128xbf16> to vector<128x128xbf16>
    %cst_62 = arith.constant dense<0.000000e+00> : vector<2x128xf32>
    %69 = tpu.matmul %66, %68, %cst_62 {dimension_numbers = #tpu.dot_dimension_numbers<[1], [0], [0], [1], [0, 0, 1, 1], [], []>} : vector<2x128xbf16>, vector<128x128xbf16>, vector<2x128xf32> -> vector<2x128xf32>
    %70 = arith.addf %65, %69 : vector<2x128xf32>
    %71 = vector.extract_strided_slice %61 {offsets = [4, 0], sizes = [2, 128], strides = [1, 1]} : vector<6x128xbf16> to vector<2x128xbf16>
    %c2_63 = arith.constant 2 : index
    %c0_64 = arith.constant 0 : index
    %c0_65 = arith.constant 0 : index
    %72 = vector.load %arg10[%c2_63, %c0_64, %c0_65] : memref<3x128x128xbf16, #tpu.memory_space<vmem>>, vector<1x128x128xbf16>
    %73 = vector.shape_cast %72 : vector<1x128x128xbf16> to vector<128x128xbf16>
    %cst_66 = arith.constant dense<0.000000e+00> : vector<2x128xf32>
    %74 = tpu.matmul %71, %73, %cst_66 {dimension_numbers = #tpu.dot_dimension_numbers<[1], [0], [0], [1], [0, 0, 1, 1], [], []>} : vector<2x128xbf16>, vector<128x128xbf16>, vector<2x128xf32> -> vector<2x128xf32>
    %75 = arith.addf %70, %74 : vector<2x128xf32>
    %c0_67 = arith.constant 0 : index
    %c0_68 = arith.constant 0 : index
    %76 = vector.load %arg11[%c0_67, %c0_68] : memref<1x128xf32, #tpu.memory_space<vmem>>, vector<1x128xf32>
    %77 = vector.broadcast %76 : vector<1x128xf32> to vector<2x128xf32>
    %78 = arith.addf %75, %77 : vector<2x128xf32>
    %c0_69 = arith.constant 0 : index
    %c0_70 = arith.constant 0 : index
    %c0_71 = arith.constant 0 : index
    %79 = vector.load %arg12[%c0_69, %c0_70, %c0_71] : memref<1x2x128xf32, #tpu.memory_space<vmem>>, vector<1x2x128xf32>
    %80 = vector.shape_cast %79 : vector<1x2x128xf32> to vector<2x128xf32>
    %81 = vector.shape_cast %78 : vector<2x128xf32> to vector<1x2x128xf32>
    tpu.vector_store %arg12[%c0_69, %c0_70, %c0_71], %81 {strides = array<i32>} : memref<1x2x128xf32, #tpu.memory_space<vmem>>, vector<1x2x128xf32>,
    return
  }
  func.func @transform_0(%arg0: i32) -> (i32, i32, i32) {
    %c0_i32 = arith.constant 0 : i32
    %c0_i32_0 = arith.constant 0 : i32
    %c0_i32_1 = arith.constant 0 : i32
    return %arg0, %c0_i32, %c0_i32_0 : i32, i32, i32
  }
  func.func @transform_1(%arg0: i32) -> (i32, i32, i32) {
    %c0_i32 = arith.constant 0 : i32
    %c0_i32_0 = arith.constant 0 : i32
    %c0_i32_1 = arith.constant 0 : i32
    %c0_i32_2 = arith.constant 0 : i32
    return %c0_i32, %c0_i32_0, %c0_i32_1 : i32, i32, i32
  }
  func.func @transform_2(%arg0: i32) -> (i32, i32) {
    %c0_i32 = arith.constant 0 : i32
    %c0_i32_0 = arith.constant 0 : i32
    %c0_i32_1 = arith.constant 0 : i32
    return %c0_i32, %c0_i32_0 : i32, i32
  }
  func.func @transform_3(%arg0: i32) -> (i32, i32, i32) {
    %c0_i32 = arith.constant 0 : i32
    %c0_i32_0 = arith.constant 0 : i32
    %c0_i32_1 = arith.constant 0 : i32
    %c0_i32_2 = arith.constant 0 : i32
    return %c0_i32, %c0_i32_0, %c0_i32_1 : i32, i32, i32
  }
  func.func @transform_4(%arg0: i32) -> (i32, i32) {
    %c0_i32 = arith.constant 0 : i32
    %c0_i32_0 = arith.constant 0 : i32
    %c0_i32_1 = arith.constant 0 : i32
    return %c0_i32, %c0_i32_0 : i32, i32
  }
  func.func @transform_5(%arg0: i32) -> (i32, i32) {
    %c0_i32 = arith.constant 0 : i32
    %c0_i32_0 = arith.constant 0 : i32
    %c0_i32_1 = arith.constant 0 : i32
    return %c0_i32, %c0_i32_0 : i32, i32
  }
  func.func @transform_6(%arg0: i32) -> (i32, i32) {
    %c0_i32 = arith.constant 0 : i32
    %c0_i32_0 = arith.constant 0 : i32
    %c0_i32_1 = arith.constant 0 : i32
    return %c0_i32, %c0_i32_0 : i32, i32
  }
  func.func @transform_7(%arg0: i32) -> (i32, i32) {
    %c0_i32 = arith.constant 0 : i32
    %c0_i32_0 = arith.constant 0 : i32
    %c0_i32_1 = arith.constant 0 : i32
    return %c0_i32, %c0_i32_0 : i32, i32
  }
  func.func @transform_8(%arg0: i32) -> (i32, i32) {
    %c0_i32 = arith.constant 0 : i32
    %c0_i32_0 = arith.constant 0 : i32
    %c0_i32_1 = arith.constant 0 : i32
    return %c0_i32, %c0_i32_0 : i32, i32
  }
  func.func @transform_9(%arg0: i32) -> (i32, i32, i32) {
    %c0_i32 = arith.constant 0 : i32
    %c0_i32_0 = arith.constant 0 : i32
    %c0_i32_1 = arith.constant 0 : i32
    %c0_i32_2 = arith.constant 0 : i32
    return %c0_i32, %c0_i32_0, %c0_i32_1 : i32, i32, i32
  }
  func.func @transform_10(%arg0: i32) -> (i32, i32) {
    %c0_i32 = arith.constant 0 : i32
    %c0_i32_0 = arith.constant 0 : i32
    %c0_i32_1 = arith.constant 0 : i32
    return %c0_i32, %c0_i32_0 : i32, i32
  }
  func.func @transform_11(%arg0: i32) -> (i32, i32, i32) {
    %c0_i32 = arith.constant 0 : i32
    %c0_i32_0 = arith.constant 0 : i32
    %c0_i32_1 = arith.constant 0 : i32
    return %arg0, %c0_i32, %c0_i32_0 : i32, i32, i32
  }
}

</mosaic_0001>

<bundles_post_ra>
// kernel: imitation_model_forward.1
= control target key start
LH: loop header
LB: loop body
LE: loop exit
PB: predicated region body
PF: predicated region fallthrough
CT: control target
= control target key end

     0   :  { %16 = vsyncpa [#allocation4], 0  ;;  %s2455_s0 = inlined_call_operand.vmem [shape: bf16[1,48,54], index: 0, kind: input, shape index: {}]   ;;  %s2456_s1 = inlined_call_operand.hbm [shape: bf16[3,54,256], index: 1, kind: input, shape index: {}]   ;;  %s2457_s2 = inlined_call_operand.vmem [shape: f32[1,128], index: 2, kind: input, shape index: {}]   ;;  %s2458_s3 = inlined_call_operand.vmem [shape: bf16[3,128,256], index: 3, kind: input, shape index: {}]   ;;  %s2459_s4 = inlined_call_operand.vmem [shape: f32[1,128], index: 4, kind: input, shape index: {}]   ;;  %s2460_s5 = inlined_call_operand.vmem [shape: bf16[16,46], index: 5, kind: input, shape index: {}]   ;;  %s2461_s6 = inlined_call_operand.vmem [shape: bf16[16,46], index: 6, kind: input, shape index: {}]   ;;  %s2462_s7 = inlined_call_operand.vmem [shape: bf16[6,14], index: 7, kind: input, shape index: {}]   ;;  %s2463_s8 = inlined_call_operand.vmem [shape: bf16[6,14], index: 8, kind: input, shape index: {}]   ;;  %s2464_s9 = inlined_call_operand.hbm [shape: bf16[3,128,128], index: 9, kind: input, shape index: {}]   ;;  %s2465_s10 = inlined_call_operand.vmem [shape: f32[1,128], index: 10, kind: input, shape index: {}]   ;;  %s2466_s11 = inlined_call_operand.hbm [shape: f32[1,2,128], index: 11, kind: output, shape index: {}]  }
   0x1   :  { %17 = vsyncpa [#allocation7], 0 }
   0x2   :  { %18 = vsyncpa [#allocation5], 0  ;;  %s2065_s17 = smov [#allocation3]   ;;  %s1993_s21 = scalar_lea.hbm %s2456_s1, 2688 }
   0x3   :  { %s26_s18 = sshll.u32 %s2065_s17, 4  ;;  %p1994_p0 = scmp.ne.s32.totalorder %s2456_s1, %s1993_s21  ;;  %s27_s18 = int_to_ptr.vmem [resolvable:$true] %s26_s18 }
   0x4   :  { %p1997_p1 = scmp.lt.u32.totalorder %s1993_s21, %s2456_s1 }
   0x6   :  { %p1999_p2 = pnand %p1997_p1, %p1994_p0 }
   0x8   :  { %2002 = shalt.err (!%p1999_p2)
}
   0x9   :  { %s2003_s26 = scalar_lea.vmem %s27_s18, 2688  ;;  %p2008_p4 = scmp.lt.s32.totalorder %s27_s18, %s27_s18 }
   0xa   :  { %p2004_p3 = scmp.ne.s32.totalorder %s27_s18, %s2003_s26  ;;  %p2009_p5 = scmp.lt.s32.totalorder %s2003_s26, %s2003_s26 }
   0xc   :  { %p2010_p6 = por %p2009_p5, %p2008_p4 }
   0xe   :  { %p2011_p7 = pnand %p2010_p6, %p2004_p3 }
  0x10   :  { %2014 = shalt.err (!%p2011_p7)
}
  0x11   :  { %s2066_s27 = smov 128   ;;  %s2067_s28 = smov 8  }
  0x12   :  { %32 = dma.hbm_to_vmem [thread:$0]  %s2456_s1, 2688, %s27_s18, [#allocation4], %s2066_s27, %s2066_s27, %s2067_s28  }
  0x13   :  { %s2068_s12 = smov [#allocation6]   ;;  %s2015_s16 = scalar_lea.hbm %s2464_s9, 3072 }
  0x14   :  { %s52_s13 = sshll.u32 %s2068_s12, 4  ;;  %p2016_p8 = scmp.ne.s32.totalorder %s2464_s9, %s2015_s16  ;;  %s53_s13 = int_to_ptr.vmem [resolvable:$true] %s52_s13 }
  0x15   :  { %p2019_p9 = scmp.lt.u32.totalorder %s2015_s16, %s2464_s9 }
  0x17   :  { %p2021_p10 = pnand %p2019_p9, %p2016_p8 }
  0x19   :  { %2024 = shalt.err (!%p2021_p10)
}
  0x1a   :  { %s2025_s22 = scalar_lea.vmem %s53_s13, 3072  ;;  %p2030_p12 = scmp.lt.s32.totalorder %s53_s13, %s53_s13 }
  0x1b   :  { %p2026_p11 = scmp.ne.s32.totalorder %s53_s13, %s2025_s22  ;;  %p2031_p13 = scmp.lt.s32.totalorder %s2025_s22, %s2025_s22 }
  0x1d   :  { %p2032_p0 = por %p2031_p13, %p2030_p12 }
  0x1f   :  { %p2033_p1 = pnand %p2032_p0, %p2026_p11 }
  0x21   :  { %2036 = shalt.err (!%p2033_p1)
}
  0x22   :  { %s2069_s1 = smov 64   ;;  %s2070_s18 = smov 4  }
  0x23   :  { %58 = dma.hbm_to_vmem [thread:$0]  %s2464_s9, 3072, %s53_s13, [#allocation7], %s2069_s1, %s2069_s1, %s2070_s18  }
  0x24   :  { %2059 = dma.done.wait [#allocation4], 2688  }
  0x25   :  { %2060 = vsyncadd [#allocation4], 4294964608 }
  0x26   :  { %2061 = dma.done.wait [#allocation7], 3072  }
  0x27   :  { %2062 = vsyncadd [#allocation7], 4294964224  ;;  %v2071_v0 = vmov 0   ;;  %v1857_v1 = vld [vmem:[#allocation3 + $0x3c] ss:$8 sps:$4 sm:$0xff]   ;;  %vm174_vm0 = vcmask 1042432  }
  0x28   :  { %213 = vmatprep.mubr.bf16.mxu0 %v2071_v0  ;;  %v1859_v2 = vld [vmem:[#allocation3 + $0x38] ss:$8 sps:$4 sm:$0xff]   ;;  %181 = vmatprep.subr.bf16.mxu0 %v1857_v1  ;;  %v1860_v3 = vld [vmem:[#allocation3 + $0x4c] ss:$8 sps:$4 sm:$0xff]   ;;  %v1862_v4 = vld [vmem:[#allocation3 + $0x48] ss:$8 sps:$4 sm:$0xff]  }
  0x29   :  { %182 = vmatpush1.bf16.msra.mxu0 %v1859_v2  ;;  %v1863_v5 = vld [vmem:[#allocation3 + $0x5c] ss:$8 sps:$4 sm:$0xff]   ;;  %v89_v6 = vld [vmem:[#allocation3 + $0x68] sm:$0x77]  ;;  %v68_v7 = vld [vmem:[%s2455_s0] sm:$0xf] }
  0x2a   :  { %183 = vmatprep.subr.bf16.mxu0 %v1860_v3  ;;  %v2166_v8 = vld [vmem:[%s2455_s0 + $0x4] sm:$0xf]  ;;  %v2172_v10 = vld [vmem:[%s2455_s0 + $0x8] sm:$0xff]   ;;  %v1540_v15 = vcombine.high %v89_v6, %v89_v6  ;;  %v1539_v16 = vcombine.low %v89_v6, %v89_v6  ;;  %v2178_v17 = vld [vmem:[%s2455_s0 + $0x10] sm:$0xf]  ;;  %vm164_vm2 = vcmask 441344  }
  0x2b   :  { %v1530_v9 = vcombine.low %v68_v7, %v2166_v8  ;;  %v1865_v11 = vld [vmem:[#allocation3 + $0x58] ss:$8 sps:$4 sm:$0xff]   ;;  %v114_v14 = vshll.u32 %v2172_v10, 16  ;;  %v81_v18 = vld [vmem:[%s2455_s0 + $0x14] sm:$0xf]  ;;  %v118_v26 = vshrl.u32 %v2172_v10, 16 }
  0x2c   :  { %v2184_v22 = vcombine.low %v2178_v17, %v81_v18  ;;  %v176_v23 = vsel %vm174_vm0, %v1539_v16, 0  ;;  %vm105_vm1 = vsmask.f32 7424  ;;  %v1873_v24 = vld [vmem:[#allocation3 + $0x4] ss:$8 sps:$4 sm:$0xff]   ;;  %v372_v57 = vrot.slane %v2172_v10, 1 }
  0x2d   :  { %184 = vmatpush1.bf16.msra.mxu0 %v1862_v4  ;;  %v107_v12 = vshrl.u32 %v1530_v9, 16  ;;  %v109_v13 = vshll.u32 %v1530_v9, 16  ;;  %v116_v21 = vrot.slane %v114_v14, 1  ;;  %v1871_v28 = vld [vmem:[#allocation3] ss:$8 sps:$4 sm:$0xff]   ;;  %vm370_vm3 = vcmask 1046528  }
  0x2e   :  { %185 = vmatprep.subr.bf16.mxu0 %v1863_v5  ;;  %v122_v27 = vshll.u32 %v2184_v22, 16  ;;  %v1876_v29 = vld [vmem:[#allocation3 + $0x14] ss:$8 sps:$4 sm:$0xff]   ;;  %v1874_v30 = vld [vmem:[#allocation3 + $0x10] ss:$8 sps:$4 sm:$0xff]   ;;  %v126_v39 = vshrl.u32 %v2184_v22, 16 }
  0x2f   :  { %v111_v19 = vrot.slane %v109_v13, 1  ;;  %v1879_v31 = vld [vmem:[#allocation3 + $0x24] ss:$8 sps:$4 sm:$0xff]   ;;  %v120_v32 = vor.u32 %v118_v26, %v116_v21  ;;  %v80_v34 = vld [vmem:[#allocation3 + $0x30] sm:$0x77]  ;;  %v374_v59 = vrot.slane %v2184_v22, 1 }
  0x30   :  { %v124_v33 = vrot.slane %v122_v27, 1  ;;  %v1877_v35 = vld [vmem:[#allocation3 + $0x20] ss:$8 sps:$4 sm:$0xff]   ;;  %v1553_v37 = vcombine.high %v80_v34, %v80_v34  ;;  %v1552_v38 = vcombine.low %v80_v34, %v80_v34  ;;  %v1884_v40 = vld [vmem:[#allocation3 + $0x74] ss:$8 sps:$4 sm:$0xff]   ;;  %v2072_v61 = vmov 0.0  }
  0x31   :  { %186 = vmatpush1.bf16.msra.mxu0 %v1865_v11  ;;  %v112_v20 = vor.u32 %v111_v19, %v107_v12  ;;  %v1882_v43 = vld [vmem:[#allocation3 + $0x70] ss:$8 sps:$4 sm:$0xff]   ;;  %v1887_v44 = vld [vmem:[#allocation3 + $0x84] ss:$8 sps:$4 sm:$0xff]   ;;  %v1885_v45 = vld [vmem:[#allocation3 + $0x80] ss:$8 sps:$4 sm:$0xff]   ;;  %v375_v60 = vsel %vm370_vm3, %v372_v57, %v374_v59  ;;  %1723 = vmatprep.subr.bf16.mxu1 %v2072_v61 }
  0x32   :  { %1541 = vmatprep.subr.msk.bf16.mxu0 %vm174_vm0, %v1540_v15  ;;  %v125_v36 = vsel %vm105_vm1, %v120_v32, %v124_v33  ;;  %v290_v41 = vsel %vm174_vm0, %v1552_v38, 0  ;;  %v128_v42 = vor.u32 %v126_v39, %v124_v33  ;;  %v1891_v46 = vld [vmem:[#allocation3 + $0x94] ss:$8 sps:$4 sm:$0xff]   ;;  %v366_v47 = vld [vmem:[#allocation3 + $0xa0] sm:$0x77]  ;;  %vm2073_vm4 = vmmov 0  }
  0x33   :  { %v117_v25 = vsel %vm105_vm1, %v112_v20, %v116_v21  ;;  %v1889_v48 = vld [vmem:[#allocation3 + $0x90] ss:$8 sps:$4 sm:$0xff]   ;;  %v1566_v49 = vcombine.high %v366_v47, %v366_v47  ;;  %v1565_v50 = vcombine.low %v366_v47, %v366_v47  ;;  %v73_v51 = vld [vmem:[%s2455_s0 + $0x14] sm:$0x7]  ;;  %1729 = vmatprep.mubr.msk.bf16.mxu1 %vm2073_vm4, %v2072_v61  ;;  %vm536_vm5 = vcmask 375808  }
  0x34   :  { %v358_v53 = vld [vmem:[%s2455_s0] sm:$0xe]  ;;  %v1545_v54 = vcombine.low %v2178_v17, %v73_v51  ;;  %v1571_v1 = vld [vmem:[%s2457_s2] ss:$0 sm:$0xff]  ;;  %v1902_v38 = vld [vmem:[%s2458_s3 + $0x94] ss:$8 sps:$4 sm:$0xff]  }
  0x35   :  { %188 = vmatpush1.bf16.msra.mxu0 %v176_v23  ;;  %v421_v52 = vsel %vm174_vm0, %v1565_v50, 0  ;;  %v1558_v55 = vcombine.low %v358_v53, %v2166_v8  ;;  %v1895_v34 = vld [vmem:[%s2460_s5] sm:$0xff]   ;;  %v1900_v39 = vld [vmem:[%s2458_s3 + $0x90] ss:$8 sps:$4 sm:$0xff]   ;;  %v1920_v50 = vld [vmem:[%s2458_s3 + $0xf4] ss:$8 sps:$4 sm:$0xff]  }
  0x36   :  { %295 = vmatprep.subr.bf16.mxu0 %v1873_v24  ;;  %v1912_v47 = vld [vmem:[%s2458_s3 + $0xd0] ss:$8 sps:$4 sm:$0xff]   ;;  %vm1092_vm6 = vcmask 113664   ;;  %s2074_s5 = smov [#allocation8]  }
  0x37   :  { %v371_v56 = vrot.slane %v1558_v55, 1  ;;  %v1918_v51 = vld [vmem:[%s2458_s3 + $0xf0] ss:$8 sps:$4 sm:$0xff]   ;;  %s1520_s18 = sshll.u32 %s2074_s5, 4  ;;  %s1521_s18 = int_to_ptr.vmem [resolvable:$true] %s1520_s18 }
  0x38   :  { %1542 = vmatmul.mubr.msk.bf16.vlgmr.msra.gmra.mrb[0].mxu0 %vm164_vm2, %v117_v25  ;;  %s2037_s23 = scalar_lea.vmem %s1521_s18, 32  ;;  %p2042_p3 = scmp.lt.s32.totalorder %s1521_s18, %s1521_s18 }
  0x39   :  { %223 = vmatprep.mubr.bf16.mxu0 %v2071_v0  ;;  %296 = vmatpush1.bf16.msra.mxu0 %v1871_v28  ;;  %v373_v58 = vsel %vm370_vm3, %v371_v56, %v372_v57  ;;  %p2038_p2 = scmp.ne.s32.totalorder %s1521_s18, %s2037_s23  ;;  %p2043_p4 = scmp.lt.s32.totalorder %s2037_s23, %s2037_s23 }
  0x3a   :  { %297 = vmatprep.subr.bf16.mxu0 %v1876_v29 }
  0x3b   :  { %p2044_p5 = por %p2043_p4, %p2042_p3 }
  0x3d   :  { %298 = vmatpush1.bf16.msra.mxu0 %v1874_v30  ;;  %p2045_p6 = pnand %p2044_p5, %p2038_p2 }
  0x3e   :  { %299 = vmatprep.subr.bf16.mxu0 %v1879_v31 }
  0x40   :  { %1543 = vmatmul.mubr.msk.bf16.gmra.mrb[4].mxu0 %vm164_vm2, %v125_v36  ;;  %v1899_v36 = vld [vmem:[%s2458_s3 + $0x84] ss:$8 sps:$4 sm:$0xff]  }
  0x41   :  { %233 = vmatprep.mubr.bf16.mxu0 %v2071_v0  ;;  %300 = vmatpush1.bf16.msra.mxu0 %v1877_v35  ;;  %v1896_v35 = vld [vmem:[%s2461_s6] sm:$0xff]  }
  0x42   :  { %1554 = vmatprep.subr.msk.bf16.mxu0 %vm174_vm0, %v1553_v37  ;;  %v1897_v37 = vld [vmem:[%s2458_s3 + $0x80] ss:$8 sps:$4 sm:$0xff]  }
  0x45   :  { %302 = vmatpush1.bf16.msra.mxu0 %v290_v41  ;;  %v1903_v41 = vld [vmem:[%s2458_s3 + $0xa0] ss:$8 sps:$4 sm:$0xff]  }
  0x46   :  { %426 = vmatprep.subr.bf16.mxu0 %v1884_v40  ;;  %v1905_v40 = vld [vmem:[%s2458_s3 + $0xa4] ss:$8 sps:$4 sm:$0xff]  }
  0x48   :  { %1544 = vmatmul.mubr.msk.bf16.gmra.mrb[8].mxu0 %vm164_vm2, %v128_v42  ;;  %v1908_v42 = vld [vmem:[%s2458_s3 + $0xb4] ss:$8 sps:$4 sm:$0xff]  }
  0x49   :  { %327 = vmatprep.mubr.bf16.mxu0 %v2071_v0 }
  0x50   :  { %1555 = vmatmul.mubr.msk.bf16.vlgmr.msra.gmra.mrb[0].mxu0 %vm164_vm2, %v1530_v9 }
  0x51   :  { %337 = vmatprep.mubr.bf16.mxu0 %v2071_v0  ;;  %427 = vmatpush1.bf16.msra.mxu0 %v1882_v43  ;;  %v1906_v43 = vld [vmem:[%s2458_s3 + $0xb0] ss:$8 sps:$4 sm:$0xff]  }
  0x52   :  { %428 = vmatprep.subr.bf16.mxu0 %v1887_v44  ;;  %v1911_v44 = vld [vmem:[%s2458_s3 + $0xc4] ss:$8 sps:$4 sm:$0xff]  }
  0x55   :  { %429 = vmatpush1.bf16.msra.mxu0 %v1885_v45  ;;  %v1909_v45 = vld [vmem:[%s2458_s3 + $0xc0] ss:$8 sps:$4 sm:$0xff]  }
  0x56   :  { %430 = vmatprep.subr.bf16.mxu0 %v1891_v46  ;;  %v1914_v46 = vld [vmem:[%s2458_s3 + $0xd4] ss:$8 sps:$4 sm:$0xff]  }
  0x58   :  { %1556 = vmatmul.mubr.msk.bf16.gmra.mrb[4].mxu0 %vm164_vm2, %v2172_v10 }
  0x59   :  { %347 = vmatprep.mubr.bf16.mxu0 %v2071_v0  ;;  %431 = vmatpush1.bf16.msra.mxu0 %v1889_v48  ;;  %v1917_v48 = vld [vmem:[%s2458_s3 + $0xe4] ss:$8 sps:$4 sm:$0xff]  }
  0x5a   :  { %1567 = vmatprep.subr.msk.bf16.mxu0 %vm174_vm0, %v1566_v49  ;;  %v1915_v49 = vld [vmem:[%s2458_s3 + $0xe0] ss:$8 sps:$4 sm:$0xff]  }
  0x5d   :  { %433 = vmatpush1.bf16.msra.mxu0 %v421_v52  ;;  %v1923_v52 = vld [vmem:[%s2458_s3 + $0x4] ss:$8 sps:$4 sm:$0xff]  }
  0x5e   :  { %1743 = vmatprep.subr.bf16.mxu0 %v2072_v61 }
  0x60   :  { %1557 = vmatmul.mubr.msk.bf16.gmra.mrb[8].mxu0 %vm164_vm2, %v1545_v54 }
  0x61   :  { %458 = vmatprep.mubr.bf16.mxu0 %v2071_v0 }
  0x68   :  { %1568 = vmatmul.mubr.msk.bf16.vlgmr.msra.gmra.mrb[0].mxu0 %vm164_vm2, %v373_v58 }
  0x69   :  { %468 = vmatprep.mubr.bf16.mxu0 %v2071_v0 }
  0x70   :  { %1569 = vmatmul.mubr.msk.bf16.gmra.mrb[4].mxu0 %vm164_vm2, %v375_v60 }
  0x71   :  { %478 = vmatprep.mubr.bf16.mxu0 %v2071_v0 }
  0x78   :  { %1570 = vmatmul.mubr.msk.bf16.gmra.mrb[8].mxu0 %vm164_vm2, %v374_v59 }
  0x79   :  { %1745 = vmatprep.mubr.msk.bf16.mxu0 %vm2073_vm4, %v2072_v61 }
 0x13b   :  { %v460_v62 = vpop.f32.mrb[0].mxu0 }
 0x13c   :  { %v462_v63 = vpop.f32.mrb[1].mxu0 }
 0x13d   :  { %v501_v2 = vmax.f32 %v460_v62, %v462_v63  ;;  %v464_v3 = vpop.f32.mrb[2].mxu0 }
 0x13e   :  { %v466_v4 = vpop.f32.mrb[3].mxu0 }
 0x13f   :  { %v514_v5 = vadd.f32 %v1571_v1, %v501_v2  ;;  %v502_v6 = vmax.f32 %v464_v3, %v466_v4 }
 0x141   :  { %v515_v7 = vadd.f32 %v1571_v1, %v502_v6  ;;  %v520_v8 = vmax.f32 %v514_v5, 0.0  ;;  %v1921_v5 = vld [vmem:[%s2458_s3] ss:$8 sps:$4 sm:$0xff]  }
 0x143   :  { %v521_v9 = vmax.f32 %v515_v7, 0.0  ;;  %v470_v10 = vpop.f32.mrb[4].mxu0  ;;  %v1926_v7 = vld [vmem:[%s2458_s3 + $0x14] ss:$8 sps:$4 sm:$0xff]  }
 0x144   :  { %v472_v11 = vpop.f32.mrb[5].mxu0 }
 0x145   :  { %v503_v12 = vmax.f32 %v470_v10, %v472_v11  ;;  %v474_v13 = vpop.f32.mrb[6].mxu0  ;;  %v526_v14 = vpack.c.bf16 %v521_v9, %v520_v8  ;;  %v1924_v8 = vld [vmem:[%s2458_s3 + $0x10] ss:$8 sps:$4 sm:$0xff]   ;;  %v1929_v9 = vld [vmem:[%s2458_s3 + $0x24] ss:$8 sps:$4 sm:$0xff]  }
 0x146   :  { %v476_v15 = vpop.f32.mrb[7].mxu0  ;;  %v1927_v10 = vld [vmem:[%s2458_s3 + $0x20] ss:$8 sps:$4 sm:$0xff]   ;;  %v1932_v11 = vld [vmem:[%s2458_s3 + $0x34] ss:$8 sps:$4 sm:$0xff]  }
 0x147   :  { %v516_v16 = vadd.f32 %v1571_v1, %v503_v12  ;;  %v504_v17 = vmax.f32 %v474_v13, %v476_v15  ;;  %1724 = vmatpush3.bf16.msra.mxu1 %v526_v14  ;;  %v1930_v12 = vld [vmem:[%s2458_s3 + $0x30] ss:$8 sps:$4 sm:$0xff]   ;;  %v1935_v13 = vld [vmem:[%s2458_s3 + $0x44] ss:$8 sps:$4 sm:$0xff]   ;;  %v1938_v15 = vld [vmem:[%s2458_s3 + $0x54] ss:$8 sps:$4 sm:$0xff]  }
 0x148   :  { %1725 = vmatprep.subr.bf16.mxu1 %v2072_v61 }
 0x149   :  { %v517_v18 = vadd.f32 %v1571_v1, %v504_v17  ;;  %v522_v19 = vmax.f32 %v516_v16, 0.0  ;;  %v1936_v16 = vld [vmem:[%s2458_s3 + $0x50] ss:$8 sps:$4 sm:$0xff]   ;;  %v1941_v17 = vld [vmem:[%s2458_s3 + $0x64] ss:$8 sps:$4 sm:$0xff]  }
 0x14b   :  { %v523_v20 = vmax.f32 %v517_v18, 0.0  ;;  %v480_v21 = vpop.f32.mrb[8].mxu0  ;;  %v1939_v18 = vld [vmem:[%s2458_s3 + $0x60] ss:$8 sps:$4 sm:$0xff]  }
 0x14c   :  { %v482_v22 = vpop.f32.mrb[9].mxu0 }
 0x14d   :  { %v505_v23 = vmax.f32 %v480_v21, %v482_v22  ;;  %v484_v24 = vpop.f32.mrb[10].mxu0  ;;  %v527_v25 = vpack.c.bf16 %v523_v20, %v522_v19  ;;  %v1944_v19 = vld [vmem:[%s2458_s3 + $0x74] ss:$8 sps:$4 sm:$0xff]   ;;  %v1942_v20 = vld [vmem:[%s2458_s3 + $0x70] ss:$8 sps:$4 sm:$0xff]  }
 0x14e   :  { %v486_v26 = vpop.f32.mrb[11].mxu0  ;;  %v1947_v21 = vld [vmem:[%s2458_s3 + $0x104] ss:$8 sps:$4 sm:$0xff]   ;;  %v1945_v22 = vld [vmem:[%s2458_s3 + $0x100] ss:$8 sps:$4 sm:$0xff]  }
 0x14f   :  { %v518_v27 = vadd.f32 %v1571_v1, %v505_v23  ;;  %v506_v28 = vmax.f32 %v484_v24, %v486_v26  ;;  %1726 = vmatpush3.bf16.msra.mxu1 %v527_v25  ;;  %v1950_v23 = vld [vmem:[%s2458_s3 + $0x114] ss:$8 sps:$4 sm:$0xff]   ;;  %v1953_v26 = vld [vmem:[%s2458_s3 + $0x124] ss:$8 sps:$4 sm:$0xff]  }
 0x150   :  { %1727 = vmatprep.subr.bf16.mxu1 %v2072_v61 }
 0x151   :  { %v519_v29 = vadd.f32 %v1571_v1, %v506_v28  ;;  %v524_v30 = vmax.f32 %v518_v27, 0.0  ;;  %v1951_v27 = vld [vmem:[%s2458_s3 + $0x120] ss:$8 sps:$4 sm:$0xff]   ;;  %v1956_v28 = vld [vmem:[%s2458_s3 + $0x134] ss:$8 sps:$4 sm:$0xff]  }
 0x153   :  { %v525_v31 = vmax.f32 %v519_v29, 0.0  ;;  %v1959_v29 = vld [vmem:[%s2458_s3 + $0x144] ss:$8 sps:$4 sm:$0xff]  }
 0x155   :  { %v528_v32 = vpack.c.bf16 %v525_v31, %v524_v30  ;;  %v1957_v30 = vld [vmem:[%s2458_s3 + $0x140] ss:$8 sps:$4 sm:$0xff]   ;;  %v1962_v31 = vld [vmem:[%s2458_s3 + $0x154] ss:$8 sps:$4 sm:$0xff]  }
 0x157   :  { %v542_v33 = vsel %vm370_vm3, %v528_v32, 0  ;;  %v1960_v32 = vld [vmem:[%s2458_s3 + $0x150] ss:$8 sps:$4 sm:$0xff]  }
 0x158   :  { %1728 = vmatpush3.bf16.msra.mxu1 %v542_v33 }
 0x159   :  { %1733 = vmatprep.subr.bf16.mxu1 %v2072_v61 }
 0x15b   :  { %1730 = vmatmul.mubr.msk.bf16.vlgmr.msra.gmra.mrb[0].mxu1 %vm536_vm5, %v1895_v34  ;;  %v1963_v34 = vld [vmem:[%s2458_s3 + $0x160] ss:$8 sps:$4 sm:$0xff]  }
 0x15c   :  { %1734 = vmatpush3.bf16.msra.mxu1 %v526_v14  ;;  %1739 = vmatprep.mubr.msk.bf16.mxu1 %vm2073_vm4, %v2072_v61  ;;  %v1933_v14 = vld [vmem:[%s2458_s3 + $0x40] ss:$8 sps:$4 sm:$0xff]  }
 0x15d   :  { %1735 = vmatprep.subr.bf16.mxu1 %v2072_v61 }
 0x160   :  { %1736 = vmatpush3.bf16.msra.mxu1 %v527_v25  ;;  %v1948_v25 = vld [vmem:[%s2458_s3 + $0x110] ss:$8 sps:$4 sm:$0xff]  }
 0x161   :  { %1737 = vmatprep.subr.bf16.mxu1 %v2072_v61 }
 0x164   :  { %1738 = vmatpush3.bf16.msra.mxu1 %v542_v33  ;;  %v1965_v33 = vld [vmem:[%s2458_s3 + $0x164] ss:$8 sps:$4 sm:$0xff]  }
 0x165   :  { %763 = vmatprep.subr.bf16.mxu1 %v1899_v36  ;;  %v1966_v36 = vld [vmem:[%s2458_s3 + $0x170] ss:$8 sps:$4 sm:$0xff]  }
 0x167   :  { %1740 = vmatmul.mubr.msk.bf16.vlgmr.msra.gmra.mrb[4].mxu1 %vm536_vm5, %v1896_v35  ;;  %v1968_v35 = vld [vmem:[%s2458_s3 + $0x174] ss:$8 sps:$4 sm:$0xff]  }
 0x168   :  { %795 = vmatprep.mubr.bf16.mxu1 %v2071_v0  ;;  %764 = vmatpush1.bf16.msra.mxu1 %v1897_v37 }
 0x169   :  { %765 = vmatprep.subr.bf16.mxu1 %v1902_v38 }
 0x16c   :  { %766 = vmatpush1.bf16.msra.mxu1 %v1900_v39  ;;  %v1972_v39 = vld [vmem:[#allocation6] sm:$0xff]  }
 0x16d   :  { %767 = vmatprep.subr.bf16.mxu1 %v1905_v40  ;;  %v1974_v40 = vld [vmem:[#allocation6 + $0x8] sm:$0xff]  }
 0x170   :  { %768 = vmatpush1.bf16.msra.mxu1 %v1903_v41  ;;  %v1976_v41 = vld [vmem:[#allocation6 + $0x10] sm:$0xff]  }
 0x171   :  { %769 = vmatprep.subr.bf16.mxu1 %v1908_v42 }
 0x174   :  { %770 = vmatpush1.bf16.msra.mxu1 %v1906_v43 }
 0x175   :  { %771 = vmatprep.subr.bf16.mxu1 %v1911_v44  ;;  %v1656_v44 = vld [vmem:[%s2459_s4] ss:$0 sm:$0xff] }
 0x178   :  { %772 = vmatpush1.bf16.msra.mxu1 %v1909_v45 }
 0x179   :  { %773 = vmatprep.subr.bf16.mxu1 %v1914_v46 }
 0x17c   :  { %774 = vmatpush1.bf16.msra.mxu1 %v1912_v47 }
 0x17d   :  { %775 = vmatprep.subr.bf16.mxu1 %v1917_v48 }
 0x180   :  { %776 = vmatpush1.bf16.msra.mxu1 %v1915_v49 }
 0x181   :  { %777 = vmatprep.subr.bf16.mxu1 %v1920_v50 }
 0x184   :  { %778 = vmatpush1.bf16.msra.mxu1 %v1918_v51 }
 0x185   :  { %886 = vmatprep.subr.bf16.mxu1 %v1923_v52 }
 0x22e   :  { %v578_v53 = vpop.f32.mrb[0].mxu1 }
 0x22f   :  { %v1731_v54 = vpop.f32.mrb[1].mxu1 }
 0x230   :  { %v581_v55 = vpop.f32.mrb[2].mxu1 }
 0x231   :  { %v1732_v56 = vpop.f32.mrb[3].mxu1 }
 0x232   :  { %v1139_v56 = vld [vmem:[%s2463_s8] sm:$0x7] }
 0x23a   :  { %v629_v57 = vpop.f32.mrb[4].mxu1 }
 0x23b   :  { %v636_v58 = vmax.f32 %v578_v53, %v629_v57  ;;  %v1741_v59 = vpop.f32.mrb[5].mxu1  ;;  %v1969_v57 = vld [vmem:[#allocation6 + $0x40] sm:$0xff]  }
 0x23c   :  { %v632_v60 = vpop.f32.mrb[6].mxu1  ;;  %v1971_v59 = vld [vmem:[#allocation6 + $0x50] sm:$0xff]  }
 0x23d   :  { %v637_v62 = vmax.f32 %v581_v55, %v632_v60  ;;  %v1742_v63 = vpop.f32.mrb[7].mxu1  ;;  %v1091_v55 = vld [vmem:[%s2462_s7] sm:$0x7]  ;;  %v1973_v60 = vld [vmem:[#allocation6 + $0x58] sm:$0xff]  }
 0x23e   :  { %v1977_v63 = vld [vmem:[#allocation6 + $0x68] sm:$0xff]  }
 0x23f   :  { %v638_v1 = vpack.c.bf16 %v637_v62, %v636_v58  ;;  %v1970_v58 = vld [vmem:[#allocation6 + $0x48] sm:$0xff]   ;;  %v1975_v62 = vld [vmem:[#allocation6 + $0x60] sm:$0xff]  }
 0x241   :  { %639 = vst [vmem:[#allocation2] sm:$0xff] %v638_v1  ;;  %v678_v2 = vshll.u32 %v638_v1, 16  ;;  %v676_v3 = vshrl.u32 %v638_v1, 16  ;;  %v1978_v1 = vld [vmem:[#allocation6 + $0x18] sm:$0xff]  }
 0x243   :  { %v680_v4 = vrot.slane %v678_v2, 1  ;;  %v1980_v2 = vld [vmem:[#allocation6 + $0x20] sm:$0xff]  }
 0x245   :  { %v681_v6 = vor.u32 %v680_v4, %v676_v3  ;;  %v1982_v3 = vld [vmem:[#allocation6 + $0x28] sm:$0xff]   ;;  %v1979_v4 = vld [vmem:[#allocation6 + $0x70] sm:$0xff]  }
 0x247   :  { %796 = vmatmul.mubr.bf16.vlgmr.msra.gmra.mrb[8].mxu1 %v681_v6  ;;  %v1981_v6 = vld [vmem:[#allocation6 + $0x78] sm:$0xff]  }
 0x248   :  { %887 = vmatpush1.bf16.msra.mxu1 %v1921_v5  ;;  %918 = vmatprep.mubr.bf16.mxu1 %v2071_v0  ;;  %v640_v24 = vld [vmem:[#allocation2] sm:$0x7f] }
 0x249   :  { %888 = vmatprep.subr.bf16.mxu1 %v1926_v7  ;;  %v929_v37 = vld [vmem:[#allocation2] sm:$0xfe]  ;;  %v1986_v7 = vld [vmem:[#allocation6 + $0x38] sm:$0xff]  }
 0x24a   :  { %v948_v38 = vrot.slane %v929_v37, 1  ;;  %v1984_v5 = vld [vmem:[#allocation6 + $0x30] sm:$0xff]  }
 0x24b   :  { %v1683_v37 = vld [vmem:[%s2465_s10] ss:$0 sm:$0xff] }
 0x24c   :  { %889 = vmatpush1.bf16.msra.mxu1 %v1924_v8 }
 0x24d   :  { %890 = vmatprep.subr.bf16.mxu1 %v1929_v9 }
 0x250   :  { %891 = vmatpush1.bf16.msra.mxu1 %v1927_v10 }
 0x251   :  { %892 = vmatprep.subr.bf16.mxu1 %v1932_v11 }
 0x254   :  { %893 = vmatpush1.bf16.msra.mxu1 %v1930_v12 }
 0x255   :  { %894 = vmatprep.subr.bf16.mxu1 %v1935_v13 }
 0x258   :  { %895 = vmatpush1.bf16.msra.mxu1 %v1933_v14 }
 0x259   :  { %896 = vmatprep.subr.bf16.mxu1 %v1938_v15 }
 0x25c   :  { %897 = vmatpush1.bf16.msra.mxu1 %v1936_v16 }
 0x25d   :  { %898 = vmatprep.subr.bf16.mxu1 %v1941_v17 }
 0x260   :  { %899 = vmatpush1.bf16.msra.mxu1 %v1939_v18  ;;  %v1983_v18 = vld [vmem:[#allocation6 + $0x80] sm:$0xff]  }
 0x261   :  { %900 = vmatprep.subr.bf16.mxu1 %v1944_v19 }
 0x264   :  { %901 = vmatpush1.bf16.msra.mxu1 %v1942_v20  ;;  %v1985_v20 = vld [vmem:[#allocation6 + $0x88] sm:$0xff]  }
 0x265   :  { %1030 = vmatprep.subr.bf16.mxu1 %v1947_v21  ;;  %v1987_v21 = vld [vmem:[#allocation6 + $0x90] sm:$0xff]  }
 0x267   :  { %919 = vmatmul.mubr.bf16.vlgmr.msra.gmra.mrb[8].mxu1 %v640_v24  ;;  %v1990_v24 = vld [vmem:[#allocation6 + $0xa8] sm:$0xff]  }
 0x268   :  { %1031 = vmatpush1.bf16.msra.mxu1 %v1945_v22  ;;  %1062 = vmatprep.mubr.bf16.mxu1 %v2071_v0  ;;  %v1954_v0 = vld [vmem:[%s2458_s3 + $0x130] ss:$8 sps:$4 sm:$0xff]   ;;  %v1988_v22 = vld [vmem:[#allocation6 + $0x98] sm:$0xff]  }
 0x269   :  { %1032 = vmatprep.subr.bf16.mxu1 %v1950_v23  ;;  %v1989_v23 = vld [vmem:[#allocation6 + $0xa0] sm:$0xff]  }
 0x26c   :  { %1033 = vmatpush1.bf16.msra.mxu1 %v1948_v25  ;;  %v1991_v25 = vld [vmem:[#allocation6 + $0xb0] sm:$0xff]  }
 0x26d   :  { %1034 = vmatprep.subr.bf16.mxu1 %v1953_v26  ;;  %v1992_v26 = vld [vmem:[#allocation6 + $0xb8] sm:$0xff]  }
 0x270   :  { %1035 = vmatpush1.bf16.msra.mxu1 %v1951_v27 }
 0x271   :  { %1036 = vmatprep.subr.bf16.mxu1 %v1956_v28 }
 0x274   :  { %1037 = vmatpush1.bf16.msra.mxu1 %v1954_v0 }
 0x275   :  { %1038 = vmatprep.subr.bf16.mxu1 %v1959_v29 }
 0x278   :  { %1039 = vmatpush1.bf16.msra.mxu1 %v1957_v30 }
 0x279   :  { %1040 = vmatprep.subr.bf16.mxu1 %v1962_v31 }
 0x27c   :  { %1041 = vmatpush1.bf16.msra.mxu1 %v1960_v32 }
 0x27d   :  { %1042 = vmatprep.subr.bf16.mxu1 %v1965_v33 }
 0x280   :  { %1043 = vmatpush1.bf16.msra.mxu1 %v1963_v34 }
 0x281   :  { %1044 = vmatprep.subr.bf16.mxu1 %v1968_v35 }
 0x284   :  { %1045 = vmatpush1.bf16.msra.mxu1 %v1966_v36 }
 0x285   :  { %1775 = vmatprep.subr.bf16.mxu1 %v2072_v61 }
 0x287   :  { %1063 = vmatmul.mubr.bf16.vlgmr.msra.gmra.mrb[8].mxu1 %v948_v38 }
 0x288   :  { %1791 = vmatprep.mubr.msk.bf16.mxu1 %vm2073_vm4, %v2072_v61  ;;  %1776 = vmatpush3.bf16.msra.mxu1 %v1972_v39 }
 0x289   :  { %1777 = vmatprep.subr.bf16.mxu1 %v2072_v61 }
 0x28c   :  { %1778 = vmatpush3.bf16.msra.mxu1 %v1974_v40 }
 0x28d   :  { %1779 = vmatprep.subr.bf16.mxu1 %v2072_v61 }
 0x290   :  { %1780 = vmatpush3.bf16.msra.mxu1 %v1976_v41 }
 0x291   :  { %1781 = vmatprep.subr.bf16.mxu1 %v2072_v61 }
 0x294   :  { %1782 = vmatpush3.bf16.msra.mxu1 %v1978_v1 }
 0x295   :  { %1783 = vmatprep.subr.bf16.mxu1 %v2072_v61 }
 0x298   :  { %1784 = vmatpush3.bf16.msra.mxu1 %v1980_v2 }
 0x299   :  { %1785 = vmatprep.subr.bf16.mxu1 %v2072_v61 }
 0x29c   :  { %1786 = vmatpush3.bf16.msra.mxu1 %v1982_v3 }
 0x29d   :  { %1787 = vmatprep.subr.bf16.mxu1 %v2072_v61 }
 0x2a0   :  { %1788 = vmatpush3.bf16.msra.mxu1 %v1984_v5 }
 0x2a1   :  { %1789 = vmatprep.subr.bf16.mxu1 %v2072_v61 }
 0x2a4   :  { %1790 = vmatpush3.bf16.msra.mxu1 %v1986_v7 }
 0x35a   :  { %v1064_v42 = vpop.f32.mrb[8].mxu1 }
 0x35b   :  { %v1066_v43 = vpop.f32.mrb[9].mxu1 }
 0x35c   :  { %v1077_v45 = vmax.f32 %v1064_v42, %v1066_v43  ;;  %v1068_v46 = vpop.f32.mrb[10].mxu1 }
 0x35d   :  { %v1070_v47 = vpop.f32.mrb[11].mxu1 }
 0x35e   :  { %v1086_v48 = vadd.f32 %v1656_v44, %v1077_v45  ;;  %v1078_v49 = vmax.f32 %v1068_v46, %v1070_v47 }
 0x360   :  { %v1087_v50 = vadd.f32 %v1656_v44, %v1078_v49  ;;  %v1088_v51 = vmax.f32 %v1086_v48, 0.0 }
 0x362   :  { %v1089_v52 = vmax.f32 %v1087_v50, 0.0 }
 0x364   :  { %v1090_v53 = vpack.c.bf16 %v1089_v52, %v1088_v51 }
 0x366   :  { %v1097_v54 = vsel %vm370_vm3, %v1090_v53, 0 }
 0x367   :  { %1744 = vmatpush3.bf16.msra.mxu0 %v1097_v54 }
 0x368   :  { %1749 = vmatprep.subr.bf16.mxu0 %v2072_v61 }
 0x36a   :  { %1746 = vmatmul.mubr.msk.bf16.vlgmr.msra.gmra.mrb[12].mxu0 %vm1092_vm6, %v1091_v55 }
 0x36b   :  { %1750 = vmatpush3.bf16.msra.mxu0 %v1097_v54  ;;  %1751 = vmatprep.mubr.msk.bf16.mxu0 %vm2073_vm4, %v2072_v61 }
 0x36c   :  { %1755 = vmatprep.subr.bf16.mxu0 %v2072_v61 }
 0x372   :  { %1752 = vmatmul.mubr.msk.bf16.vlgmr.msra.gmra.mrb[16].mxu0 %vm1092_vm6, %v1139_v56 }
 0x373   :  { %1756 = vmatpush3.bf16.msra.mxu0 %v1969_v57  ;;  %1771 = vmatprep.mubr.msk.bf16.mxu0 %vm2073_vm4, %v2072_v61 }
 0x374   :  { %1757 = vmatprep.subr.bf16.mxu0 %v2072_v61 }
 0x377   :  { %1758 = vmatpush3.bf16.msra.mxu0 %v1970_v58 }
 0x378   :  { %1759 = vmatprep.subr.bf16.mxu0 %v2072_v61 }
 0x37b   :  { %1760 = vmatpush3.bf16.msra.mxu0 %v1971_v59 }
 0x37c   :  { %1761 = vmatprep.subr.bf16.mxu0 %v2072_v61 }
 0x37f   :  { %1762 = vmatpush3.bf16.msra.mxu0 %v1973_v60 }
 0x380   :  { %1763 = vmatprep.subr.bf16.mxu0 %v2072_v61 }
 0x383   :  { %1764 = vmatpush3.bf16.msra.mxu0 %v1975_v62 }
 0x384   :  { %1765 = vmatprep.subr.bf16.mxu0 %v2072_v61 }
 0x387   :  { %1766 = vmatpush3.bf16.msra.mxu0 %v1977_v63 }
 0x388   :  { %1767 = vmatprep.subr.bf16.mxu0 %v2072_v61 }
 0x38b   :  { %1768 = vmatpush3.bf16.msra.mxu0 %v1979_v4 }
 0x38c   :  { %1769 = vmatprep.subr.bf16.mxu0 %v2072_v61 }
 0x38f   :  { %1770 = vmatpush3.bf16.msra.mxu0 %v1981_v6 }
 0x390   :  { %1795 = vmatprep.subr.bf16.mxu0 %v2072_v61 }
 0x43d   :  { %v1133_v8 = vpop.f32.mrb[12].mxu0 }
 0x43e   :  { %v1747_v9 = vpop.f32.mrb[13].mxu0 }
 0x43f   :  { %v1136_v10 = vpop.f32.mrb[14].mxu0 }
 0x440   :  { %v1748_v11 = vpop.f32.mrb[15].mxu0 }
 0x445   :  { %v1177_v12 = vpop.f32.mrb[16].mxu0 }
 0x446   :  { %v1183_v13 = vmax.f32 %v1133_v8, %v1177_v12  ;;  %v1753_v14 = vpop.f32.mrb[17].mxu0 }
 0x447   :  { %v1180_v15 = vpop.f32.mrb[18].mxu0 }
 0x448   :  { %v1184_v16 = vpack.c.bf16 %v1183_v13, %v1183_v13  ;;  %v1754_v17 = vpop.f32.mrb[19].mxu0 }
 0x44a   :  { %v1219_v19 = vrot.slane %v1184_v16, 1  ;;  %1792 = vmatmul.mubr.bf16.vlgmr.msra.gmra.mrb[12].mxu1 %v1184_v16  ;;  %v1414_v27 = vrot.slane %v1184_v16, 2 }
 0x44c   :  { %1772 = vmatmul.mubr.bf16.vlgmr.msra.gmra.mrb[20].mxu0 %v1219_v19 }
 0x44d   :  { %1796 = vmatpush3.bf16.msra.mxu0 %v1983_v18  ;;  %1811 = vmatprep.mubr.msk.bf16.mxu0 %vm2073_vm4, %v2072_v61 }
 0x44e   :  { %1797 = vmatprep.subr.bf16.mxu0 %v2072_v61 }
 0x451   :  { %1798 = vmatpush3.bf16.msra.mxu0 %v1985_v20 }
 0x452   :  { %1799 = vmatprep.subr.bf16.mxu0 %v2072_v61 }
 0x455   :  { %1800 = vmatpush3.bf16.msra.mxu0 %v1987_v21 }
 0x456   :  { %1801 = vmatprep.subr.bf16.mxu0 %v2072_v61 }
 0x459   :  { %1802 = vmatpush3.bf16.msra.mxu0 %v1988_v22 }
 0x45a   :  { %1803 = vmatprep.subr.bf16.mxu0 %v2072_v61 }
 0x45d   :  { %1804 = vmatpush3.bf16.msra.mxu0 %v1989_v23 }
 0x45e   :  { %1805 = vmatprep.subr.bf16.mxu0 %v2072_v61 }
 0x461   :  { %1806 = vmatpush3.bf16.msra.mxu0 %v1990_v24 }
 0x462   :  { %1807 = vmatprep.subr.bf16.mxu0 %v2072_v61 }
 0x465   :  { %1808 = vmatpush3.bf16.msra.mxu0 %v1991_v25 }
 0x466   :  { %1809 = vmatprep.subr.bf16.mxu0 %v2072_v61 }
 0x469   :  { %1810 = vmatpush3.bf16.msra.mxu0 %v1992_v26 }
 0x46c   :  { %1812 = vmatmul.mubr.bf16.vlgmr.msra.gmra.mrb[24].mxu0 %v1414_v27 }
 0x51d   :  { %v1391_v28 = vpop.f32.mrb[12].mxu1 }
 0x51e   :  { %v1793_v0 = vpop.f32.mrb[13].mxu1 }
 0x51f   :  { %v1303_v29 = vpop.f32.mrb[20].mxu0  ;;  %v1394_v30 = vpop.f32.mrb[14].mxu1 }
 0x520   :  { %v1392_v31 = vadd.f32 %v1391_v28, %v1303_v29  ;;  %v1773_v32 = vpop.f32.mrb[21].mxu0  ;;  %v1794_v33 = vpop.f32.mrb[15].mxu1 }
 0x521   :  { %v1306_v34 = vpop.f32.mrb[22].mxu0 }
 0x522   :  { %v1774_v35 = vpop.f32.mrb[23].mxu0 }
 0x53f   :  { %v1498_v36 = vpop.f32.mrb[24].mxu0 }
 0x540   :  { %v1504_v61 = vadd.f32 %v1498_v36, %v1392_v31  ;;  %v1813_v38 = vpop.f32.mrb[25].mxu0 }
 0x541   :  { %v1501_v39 = vpop.f32.mrb[26].mxu0 }
 0x542   :  { %v1512_v40 = vadd.f32 %v1683_v37, %v1504_v61  ;;  %v1814_v41 = vpop.f32.mrb[27].mxu0 }
 0x544   :  { %1513 = vst [vmem:[#allocation8] sm:$0x3] %v1512_v40 }
 0x545   :  { %2048 = shalt.err (!%p2045_p6)
}
 0x546   :  { %s2049_s10 = scalar_lea.hbm %s2466_s11, 32 }
 0x547   :  { %p2050_p7 = scmp.ne.s32.totalorder %s2466_s11, %s2049_s10  ;;  %p2053_p8 = scmp.lt.u32.totalorder %s2049_s10, %s2466_s11 }
 0x549   :  { %p2055_p9 = pnand %p2053_p8, %p2050_p7 }
 0x54b   :  { %2058 = shalt.err (!%p2055_p9)
}
 0x54c   :  { %1523 = dma.vmem_to_hbm [thread:$0]  %s1521_s18, 32, %s2466_s11, [#allocation5]  }
 0x54d   :  { %2063 = dma.done.wait [#allocation5], 32  }
 0x54e   :  { %2064 = vsyncadd [#allocation5], 4294967264 }
 0x54f   :  { %1527 = vsyncpa [#allocation4], 1 }
 0x550   :  { %1528 = vsyncpa [#allocation7], 1 }
 0x551   :  { %1529 = vsyncpa [#allocation5], 1 }

</bundles_post_ra>
